<compile_context>
chip_gen: v5e
topology: v5e:2x2
jax: 0.10.0
libtpu: 0.0.40
codegen_flags: <defaults>
</compile_context>

<pallas_src>
from types import SimpleNamespace

import numpy as np
import jax
import jax.numpy as jnp
from jax.experimental import pallas as pl
from jax.experimental.pallas import tpu as pltpu

# ---- config (mirrors the PyTorch `config` module the reference code uses) ----
config = SimpleNamespace(
    num_tasks=3,
    num_classes=10,
    alpha=0.1,
    beta=0.01,
    regularization="l2_norm",
)

LANES = 128
MAX_BLOCK_ROWS = 1024            # 1024x128 f32 block = 512 KiB; x2 slabs x2 bufs
_PREFIX_LEN = len("feature_extractor.")   # matches name[18:] in the reference


def _round_up(n, m):
    return ((n + m - 1) // m) * m


# ----------------------------- fused forward kernel ---------------------------
def _fused_kernel(logits_ref, tgt_ref, curr_ref, prev_ref, seg_ref, coef_ref,
                  flag_ref, out_ref, ss_ref):
    """Grid over slab row-blocks; CE + finalize happen in the last step.

    logits_ref : (T, C, B) f32   whole array, batch on the lane axis
    tgt_ref    : (T, 1, B) int32 class labels
    curr_ref   : (BR, 128) f32   current-param slab block
    prev_ref   : (BR, 128) f32   prev-param slab block (zeros for fc rows)
    seg_ref    : (BR, 1)   int8  parameter id per row (-1 for pad rows)
    coef_ref   : (1, 128)  f32   per-param weight (0.5*beta fc, 0.5*alpha conv)
    flag_ref   : (1,)      int32 SMEM, 0 -> prev model is None (skip reg work)
    out_ref    : (T + 2,)  f32   SMEM -> [ce_0..ce_{T-1}, reg_loss, total_loss]
    ss_ref     : (1, 128)  f32   VMEM scratch: per-param sum of squares
    """
    step = pl.program_id(0)
    n_steps = pl.num_programs(0)

    @pl.when(step == 0)
    def _init():
        ss_ref[...] = jnp.zeros_like(ss_ref)

    # --- regularizer partial: per-parameter sum of squares of (curr - prev) ---
    @pl.when(flag_ref[0] != 0)
    def _reg_partial():
        d = curr_ref[...] - prev_ref[...]                  # diff fused in-kernel
        row_sq = jnp.sum(d * d, axis=-1, keepdims=True)    # (BR, 1)
        br = d.shape[0]
        lane = jax.lax.broadcasted_iota(jnp.int32, (br, LANES), 1)
        seg = seg_ref[...].astype(jnp.int32)               # (BR, 1); -1 = pad
        onehot = (lane == seg).astype(jnp.float32)         # (BR, 128)
        ss_ref[...] = ss_ref[...] + jnp.sum(onehot * row_sq, axis=0,
                                            keepdims=True)

    @pl.when(step == n_steps - 1)
    def _finalize():
        # --- cross entropy, all tasks at once; no log-softmax temporary -------
        x = logits_ref[...]                                 # (T, C, B)
        tgt = tgt_ref[...]                                  # (T, 1, B)
        T, _, B = x.shape
        m = jnp.max(x, axis=1, keepdims=True)
        lse = jnp.log(jnp.sum(jnp.exp(x - m), axis=1, keepdims=True)) + m
        cls = jax.lax.broadcasted_iota(jnp.int32, x.shape, 1)
        tgt_logit = jnp.sum(jnp.where(cls == tgt, x, 0.0), axis=1, keepdims=True)
        nll = lse - tgt_logit                               # (T, 1, B)

        inv_b = 1.0 / B
        total = 0.0
        for t in range(T):                                  # T is tiny & static
            loss_t = jnp.sum(nll[t]) * inv_b                # CrossEntropy 'mean'
            out_ref[t] = loss_t
            total = total + loss_t

        # --- regularizer finalize: sqrt of accumulated per-param sums ---------
        ss = ss_ref[...]
        norms = jnp.where(ss > 0.0, jnp.sqrt(ss), 0.0)      # guard sqrt(0)
        reg = jnp.sum(coef_ref[...] * norms)                # weighted ||.||_F sum
        out_ref[T] = reg
        out_ref[T + 1] = total + reg


# --------------------- one-time host-side regularizer plan --------------------
def _dummy_plan():
    n_rows = 32
    return ((), n_rows, n_rows, 1,
            jnp.zeros((n_rows, LANES), jnp.float32),
            jnp.full((n_rows, 1), -1, jnp.int8),
            jnp.zeros((1, LANES), jnp.float32),
            jnp.zeros((1,), jnp.int32))


def _plan_regularizer(curr_params, prev_params):
    """Built ONCE per (param-layout, prev_model): packing plan + constants.

    Returns (entries, n_rows, block_rows, n_blocks, prev_slab, seg, coef, flag).
    entries = tuple of (name, flat_size, rows) in packing order.
    Invariant: the row tail past each param's flat size is zero in BOTH slabs.
    """
    if prev_params is None:                 # reference regularize() returns 0
        return _dummy_plan()
    if config.regularization != "l2_norm":
        # TODO(synk): 'cosine' regularization branch not implemented (reference
        #             adds a per-row cosine-similarity vector to a scalar).
        raise NotImplementedError("only l2_norm regularization is supported")

    entries, prev_pieces, seg_rows, coefs = [], [], [], []
    pid = 0
    for name, param in curr_params.items():
        size = int(np.prod(param.shape))
        if name.startswith("fc"):
            w = 0.5 * config.beta
            prev_flat = np.zeros((size,), np.float32)       # fc: prev slab = 0
        else:
            old = name[_PREFIX_LEN:]
            if old not in prev_params:
                continue
            w = 0.5 * config.alpha
            prev_flat = np.asarray(prev_params[old], np.float32).reshape(-1)
        rows = _round_up(max(size, 1), LANES) // LANES
        prev_pieces.append(
            np.pad(prev_flat, (0, rows * LANES - size)).reshape(rows, LANES))
        seg_rows.append(np.full((rows, 1), pid, np.int8))
        coefs.append(w)
        entries.append((name, size, rows))
        pid += 1

    if not entries:
        return _dummy_plan()
    assert pid <= LANES, "more than 128 regularized params: chunk the coef lanes"

    r_raw = sum(e[2] for e in entries)
    if r_raw <= MAX_BLOCK_ROWS:
        n_rows = _round_up(max(r_raw, 32), 32)
        block_rows = n_rows                      # single full-array block
    else:
        n_rows = _round_up(r_raw, MAX_BLOCK_ROWS)
        block_rows = MAX_BLOCK_ROWS
    n_blocks = n_rows // block_rows

    prev_np = np.concatenate(prev_pieces, axis=0)
    seg_np = np.concatenate(seg_rows, axis=0)
    pad = n_rows - r_raw
    if pad:
        prev_np = np.concatenate([prev_np, np.zeros((pad, LANES), np.float32)], 0)
        seg_np = np.concatenate([seg_np, np.full((pad, 1), -1, np.int8)], 0)
    coef_np = np.zeros((1, LANES), np.float32)
    coef_np[0, :pid] = np.asarray(coefs, np.float32)

    return (tuple(entries), n_rows, block_rows, n_blocks,
            jnp.asarray(prev_np), jnp.asarray(seg_np),
            jnp.asarray(coef_np), jnp.ones((1,), jnp.int32))


def _pack_curr_slab(curr_params, entries, n_rows):
    """Traced (inside jit): pack the LIVE current params into the (R,128) slab."""
    if not entries:
        return jnp.zeros((n_rows, LANES), jnp.float32)
    pieces = []
    for name, size, rows in entries:
        v = jnp.asarray(curr_params[name], jnp.float32).reshape(-1)
        v = jnp.pad(v, (0, rows * LANES - size))
        pieces.append(v.reshape(rows, LANES))
    slab = jnp.concatenate(pieces, axis=0)
    used = slab.shape[0]
    if n_rows > used:
        slab = jnp.pad(slab, ((0, n_rows - used), (0, 0)))
    return slab


# ------------------------------ module semantics ------------------------------
def _make_forward(entries, n_rows, block_rows, n_blocks):
    T, C = config.num_tasks, config.num_classes

    def forward(preds, targets, curr_params, prev_slab, seg, coef, flag):
        # batch on the lane axis -> dense vregs for the CE reductions
        logits = jnp.stack(
            [p.reshape(-1, C).astype(jnp.float32).T for p in preds], axis=0)
        B = logits.shape[2]
        tgt = jnp.transpose(targets.astype(jnp.int32))[:, None, :]   # (T, 1, B)
        curr_slab = _pack_curr_slab(curr_params, entries, n_rows)

        slab_bytes = n_rows * LANES * 4
        cost = pl.CostEstimate(
            flops=6 * n_rows * LANES + 6 * T * B * C,
            transcendentals=T * B * C + LANES,
            bytes_accessed=2 * slab_bytes + n_rows + 4 * (T * C * B + T * B)
                           + 4 * (LANES + T + 3))

        out = pl.pallas_call(
            _fused_kernel,
            grid=(n_blocks,),
            in_specs=[
                pl.BlockSpec(memory_space=pltpu.MemorySpace.VMEM),    # logits
                pl.BlockSpec(memory_space=pltpu.MemorySpace.VMEM),    # targets
                pl.BlockSpec((block_rows, LANES), lambda i: (i, 0)),  # curr slab
                pl.BlockSpec((block_rows, LANES), lambda i: (i, 0)),  # prev slab
                pl.BlockSpec((block_rows, 1), lambda i: (i, 0)),      # seg (int8)
                pl.BlockSpec(memory_space=pltpu.MemorySpace.VMEM),    # coef
                pl.BlockSpec(memory_space=pltpu.MemorySpace.SMEM),    # has_reg
            ],
            out_specs=pl.BlockSpec(memory_space=pltpu.MemorySpace.SMEM),
            out_shape=jax.ShapeDtypeStruct((T + 2,), jnp.float32),
            scratch_shapes=[pltpu.VMEM((1, LANES), jnp.float32)],
            compiler_params=pltpu.CompilerParams(
                dimension_semantics=("arbitrary",)),
            cost_estimate=cost,
        )(logits, tgt, curr_slab, prev_slab, seg, coef, flag)

        loss = [out[i] for i in range(T)]
        reg_loss = out[T]
        total_loss = out[T + 1:T + 2]         # shape (1,), mirrors torch.Tensor([0])
        return loss, reg_loss, total_loss

    return forward


class MultiTaskLossTPU:
    """Forward of the PyTorch MultiTaskLoss.  prev_model (and the parameter
    layout) is fixed at construction so the regularizer constants are packed
    exactly once; each call is one jitted program (curr-slab pack + 1 kernel)."""

    def __init__(self, curr_params, prev_params):
        (entries, n_rows, block_rows, n_blocks, prev_slab, seg, coef,
         flag) = _plan_regularizer(curr_params, prev_params)
        self._consts = (prev_slab, seg, coef, flag)
        self._fwd = jax.jit(_make_forward(entries, n_rows, block_rows, n_blocks))

    def __call__(self, preds, targets, curr_params):
        return self._fwd(list(preds), targets, curr_params, *self._consts)


# ----------------------------------- main --------------------------------------
if __name__ == "__main__":
    B, T, C = 8, config.num_tasks, config.num_classes
    key = jax.random.PRNGKey(0)
    keys = jax.random.split(key, 16)

    preds = [jax.random.normal(keys[i], (B, C), jnp.float32) for i in range(T)]
    targets = jax.random.randint(keys[T], (B, T), 0, C, jnp.int32)

    curr_params = {
        "fc.weight": 0.1 * jax.random.normal(keys[4], (C, 32), jnp.float32),
        "fc.bias": 0.1 * jax.random.normal(keys[5], (C,), jnp.float32),
        "feature_extractor.conv1.weight":
            0.1 * jax.random.normal(keys[6], (4, 3, 3, 3), jnp.float32),
        "feature_extractor.conv1.bias":
            0.1 * jax.random.normal(keys[7], (4,), jnp.float32),
    }
    prev_params = {
        "conv1.weight": 0.1 * jax.random.normal(keys[8], (4, 3, 3, 3), jnp.float32),
        "conv1.bias": 0.1 * jax.random.normal(keys[9], (4,), jnp.float32),
    }

    # pure-JAX CE reference (shared by all cases)
    ref_losses = []
    for i in range(T):
        lp = jax.nn.log_softmax(preds[i], axis=-1)
        ref_losses.append(-jnp.mean(lp[jnp.arange(B), targets[:, i]]))

    # ---- case 1: with prev model (single slab block) --------------------------
    mtl = MultiTaskLossTPU(curr_params, prev_params)
    loss, reg_loss, total_loss = mtl(preds, targets, curr_params)
    jax.block_until_ready(total_loss)

    ref_fc = sum(jnp.linalg.norm(v.reshape(-1))
                 for k, v in curr_params.items() if k.startswith("fc"))
    ref_conv = sum(
        jnp.linalg.norm((curr_params[k] - prev_params[k[_PREFIX_LEN:]]).reshape(-1))
        for k in curr_params if not k.startswith("fc"))
    ref_reg = 0.5 * config.alpha * ref_conv + 0.5 * config.beta * ref_fc
    ref_total = sum(ref_losses) + ref_reg
    assert jnp.allclose(jnp.stack(loss), jnp.stack(ref_losses), atol=1e-4, rtol=1e-4)
    assert jnp.allclose(reg_loss, ref_reg, atol=1e-4, rtol=1e-4)
    assert jnp.allclose(total_loss[0], ref_total, atol=1e-4, rtol=1e-4)

    # ---- case 2: prev model is None -> regularize() returns 0 -----------------
    mtl0 = MultiTaskLossTPU(curr_params, None)
    loss0, reg0, total0 = mtl0(preds, targets, curr_params)
    jax.block_until_ready(total0)
    assert jnp.allclose(reg0, 0.0, atol=1e-6)
    assert jnp.allclose(total0[0], sum(ref_losses), atol=1e-4, rtol=1e-4)

    # ---- case 3: bigger params -> multi-block row grid + VMEM accumulator -----
    big_curr = {
        "fc.weight": 0.05 * jax.random.normal(keys[10], (64, 4096), jnp.float32),
        "feature_extractor.conv2.weight":
            0.05 * jax.random.normal(keys[11], (32, 32, 3, 3), jnp.float32),
    }
    big_prev = {
        "conv2.weight": 0.05 * jax.random.normal(keys[12], (32, 32, 3, 3),
                                                 jnp.float32),
    }
    mtl_big = MultiTaskLossTPU(big_curr, big_prev)
    loss_b, reg_b, total_b = mtl_big(preds, targets, big_curr)
    jax.block_until_ready(total_b)
    ref_reg_b = (0.5 * config.beta
                 * jnp.linalg.norm(big_curr["fc.weight"].reshape(-1))
                 + 0.5 * config.alpha
                 * jnp.linalg.norm((big_curr["feature_extractor.conv2.weight"]
                                    - big_prev["conv2.weight"]).reshape(-1)))
    assert jnp.allclose(reg_b, ref_reg_b, atol=1e-3, rtol=1e-3)
    assert jnp.allclose(total_b[0], sum(ref_losses) + ref_reg_b,
                        atol=1e-3, rtol=1e-3)

    print("KERNEL_OK")
</pallas_src>

<mosaic_0001>
module attributes {stable_mosaic.version = 11 : i64} {
  func.func @_fused_kernel(%arg0: i32, %arg1: memref<3x10x8xf32, #tpu.memory_space<vmem>>, %arg2: memref<3x1x8xi32, #tpu.memory_space<vmem>>, %arg3: memref<32x128xf32, #tpu.memory_space<vmem>>, %arg4: memref<32x128xf32, #tpu.memory_space<vmem>>, %arg5: memref<32x1xi8, #tpu.memory_space<vmem>>, %arg6: memref<1x128xf32, #tpu.memory_space<vmem>>, %arg7: memref<1xi32, #tpu.memory_space<smem>>, %arg8: memref<5xf32, #tpu.memory_space<smem>>, %arg9: memref<1x128xf32, #tpu.memory_space<vmem>>) attributes {dimension_semantics = [#tpu.dimension_semantics<arbitrary>], iteration_bounds = array<i64: 1>, scalar_prefetch = 0 : i64, scratch_operands = 1 : i64, tpu.core_type = #tpu.core_type<tc>, window_params = [{pipeline_mode = #tpu.pipeline_mode<synchronous>, transform_indices = @transform_0, window_bounds = array<i64: 3, 10, 8>}, {pipeline_mode = #tpu.pipeline_mode<synchronous>, transform_indices = @transform_1, window_bounds = array<i64: 3, 1, 8>}, {transform_indices = @transform_2, window_bounds = array<i64: 32, 128>}, {transform_indices = @transform_3, window_bounds = array<i64: 32, 128>}, {transform_indices = @transform_4, window_bounds = array<i64: 32, 1>}, {pipeline_mode = #tpu.pipeline_mode<synchronous>, transform_indices = @transform_5, window_bounds = array<i64: 1, 128>}, {transform_indices = @transform_6, window_bounds = array<i64: 1>}, {transform_indices = @transform_7, window_bounds = array<i64: 5>}]} {
    %c0_i32 = arith.constant 0 : i32
    %0 = arith.cmpi eq, %arg0, %c0_i32 : i32
    %1 = arith.extui %0 : i1 to i32
    %c0_i32_0 = arith.constant 0 : i32
    %2 = arith.cmpi ne, %1, %c0_i32_0 : i32
    scf.if %2 {
      %cst = arith.constant 0.000000e+00 : f32
      %10 = vector.broadcast %cst : f32 to vector<1x128xf32>
      %c0_5 = arith.constant 0 : index
      %c0_6 = arith.constant 0 : index
      %11 = vector.load %arg9[%c0_5, %c0_6] : memref<1x128xf32, #tpu.memory_space<vmem>>, vector<1x128xf32>
      tpu.vector_store %arg9[%c0_5, %c0_6], %10 {strides = array<i32>} : memref<1x128xf32, #tpu.memory_space<vmem>>, vector<1x128xf32>,
    } else {
    }
    %c0 = arith.constant 0 : index
    %3 = memref.load %arg7[%c0] : memref<1xi32, #tpu.memory_space<smem>>
    %c0_i32_1 = arith.constant 0 : i32
    %4 = arith.cmpi ne, %3, %c0_i32_1 : i32
    %5 = arith.extui %4 : i1 to i32
    %c0_i32_2 = arith.constant 0 : i32
    %6 = arith.cmpi ne, %5, %c0_i32_2 : i32
    scf.if %6 {
      %c0_5 = arith.constant 0 : index
      %c0_6 = arith.constant 0 : index
      %10 = vector.load %arg3[%c0_5, %c0_6] : memref<32x128xf32, #tpu.memory_space<vmem>>, vector<32x128xf32>
      %c0_7 = arith.constant 0 : index
      %c0_8 = arith.constant 0 : index
      %11 = vector.load %arg4[%c0_7, %c0_8] : memref<32x128xf32, #tpu.memory_space<vmem>>, vector<32x128xf32>
      %12 = arith.subf %10, %11 : vector<32x128xf32>
      %13 = arith.mulf %12, %12 : vector<32x128xf32>
      %cst = arith.constant dense<0.000000e+00> : vector<32xf32>
      %14 = vector.multi_reduction <add>, %13, %cst [1] : vector<32x128xf32> to vector<32xf32>
      %15 = vector.shape_cast %14 : vector<32xf32> to vector<32x1xf32>
      %16 = tpu.iota {dimensions = array<i32: 1>} : vector<32x128xi32>
      %c0_9 = arith.constant 0 : index
      %c0_10 = arith.constant 0 : index
      %17 = vector.load %arg5[%c0_9, %c0_10] : memref<32x1xi8, #tpu.memory_space<vmem>>, vector<32x1xi8>
      %18 = arith.extsi %17 : vector<32x1xi8> to vector<32x1xi32>
      %19 = vector.broadcast %18 : vector<32x1xi32> to vector<32x128xi32>
      %20 = arith.cmpi eq, %16, %19 : vector<32x128xi32>
      %21 = arith.extui %20 : vector<32x128xi1> to vector<32x128xi32>
      %22 = arith.sitofp %21 : vector<32x128xi32> to vector<32x128xf32>
      %c0_11 = arith.constant 0 : index
      %c0_12 = arith.constant 0 : index
      %23 = vector.load %arg9[%c0_11, %c0_12] : memref<1x128xf32, #tpu.memory_space<vmem>>, vector<1x128xf32>
      %24 = vector.broadcast %15 : vector<32x1xf32> to vector<32x128xf32>
      %25 = arith.mulf %22, %24 : vector<32x128xf32>
      %cst_13 = arith.constant dense<0.000000e+00> : vector<128xf32>
      %26 = vector.multi_reduction <add>, %25, %cst_13 [0] : vector<32x128xf32> to vector<128xf32>
      %27 = vector.shape_cast %26 : vector<128xf32> to vector<1x128xf32>
      %28 = arith.addf %23, %27 : vector<1x128xf32>
      %c0_14 = arith.constant 0 : index
      %c0_15 = arith.constant 0 : index
      %29 = vector.load %arg9[%c0_14, %c0_15] : memref<1x128xf32, #tpu.memory_space<vmem>>, vector<1x128xf32>
      tpu.vector_store %arg9[%c0_14, %c0_15], %28 {strides = array<i32>} : memref<1x128xf32, #tpu.memory_space<vmem>>, vector<1x128xf32>,
    } else {
    }
    %c0_i32_3 = arith.constant 0 : i32
    %7 = arith.cmpi eq, %arg0, %c0_i32_3 : i32
    %8 = arith.extui %7 : i1 to i32
    %c0_i32_4 = arith.constant 0 : i32
    %9 = arith.cmpi ne, %8, %c0_i32_4 : i32
    scf.if %9 {
      %c0_5 = arith.constant 0 : index
      %c0_6 = arith.constant 0 : index
      %c0_7 = arith.constant 0 : index
      %10 = vector.load %arg1[%c0_5, %c0_6, %c0_7] : memref<3x10x8xf32, #tpu.memory_space<vmem>>, vector<3x10x8xf32>
      %c0_8 = arith.constant 0 : index
      %c0_9 = arith.constant 0 : index
      %c0_10 = arith.constant 0 : index
      %11 = vector.load %arg2[%c0_8, %c0_9, %c0_10] : memref<3x1x8xi32, #tpu.memory_space<vmem>>, vector<3x1x8xi32>
      %cst = arith.constant dense<0xFF800000> : vector<3x8xf32>
      %12 = vector.multi_reduction <maximumf>, %10, %cst [1] : vector<3x10x8xf32> to vector<3x8xf32>
      %13 = vector.shape_cast %12 : vector<3x8xf32> to vector<3x1x8xf32>
      %14 = vector.broadcast %13 : vector<3x1x8xf32> to vector<3x10x8xf32>
      %15 = arith.subf %10, %14 : vector<3x10x8xf32>
      %16 = math.exp %15 : vector<3x10x8xf32>
      %cst_11 = arith.constant dense<0.000000e+00> : vector<3x8xf32>
      %17 = vector.multi_reduction <add>, %16, %cst_11 [1] : vector<3x10x8xf32> to vector<3x8xf32>
      %18 = vector.shape_cast %17 : vector<3x8xf32> to vector<3x1x8xf32>
      %19 = math.log %18 : vector<3x1x8xf32>
      %20 = arith.addf %19, %13 : vector<3x1x8xf32>
      %21 = tpu.iota {dimensions = array<i32: 1>} : vector<3x10x8xi32>
      %22 = vector.broadcast %11 : vector<3x1x8xi32> to vector<3x10x8xi32>
      %23 = arith.cmpi eq, %21, %22 : vector<3x10x8xi32>
      %cst_12 = arith.constant 0.000000e+00 : f32
      %24 = vector.broadcast %cst_12 : f32 to vector<3x10x8xf32>
      %25 = arith.select %23, %10, %24 : vector<3x10x8xi1>, vector<3x10x8xf32>
      %cst_13 = arith.constant dense<0.000000e+00> : vector<3x8xf32>
      %26 = vector.multi_reduction <add>, %25, %cst_13 [1] : vector<3x10x8xf32> to vector<3x8xf32>
      %27 = vector.shape_cast %26 : vector<3x8xf32> to vector<3x1x8xf32>
      %28 = arith.subf %20, %27 : vector<3x1x8xf32>
      %29 = vector.extract_strided_slice %28 {offsets = [0, 0, 0], sizes = [1, 1, 8], strides = [1, 1, 1]} : vector<3x1x8xf32> to vector<1x1x8xf32>
      %30 = vector.shape_cast %29 : vector<1x1x8xf32> to vector<1x8xf32>
      %31 = vector.shape_cast %30 : vector<1x8xf32> to vector<1x1x8xf32>
      %cst_14 = arith.constant dense<0.000000e+00> : vector<1xf32>
      %32 = vector.multi_reduction <add>, %31, %cst_14 [1, 2] : vector<1x1x8xf32> to vector<1xf32>
      %33 = vector.shape_cast %32 : vector<1xf32> to vector<1x1x1xf32>
      %34 = vector.extract %33[0, 0, 0] : f32 from vector<1x1x1xf32>
      %cst_15 = arith.constant 1.250000e-01 : f32
      %35 = arith.mulf %34, %cst_15 : f32
      %c0_16 = arith.constant 0 : index
      %36 = memref.load %arg8[%c0_16] : memref<5xf32, #tpu.memory_space<smem>>
      memref.store %35, %arg8[%c0_16] : memref<5xf32, #tpu.memory_space<smem>>
      %cst_17 = arith.constant 0.000000e+00 : f32
      %37 = arith.addf %cst_17, %35 : f32
      %38 = vector.extract_strided_slice %28 {offsets = [1, 0, 0], sizes = [1, 1, 8], strides = [1, 1, 1]} : vector<3x1x8xf32> to vector<1x1x8xf32>
      %39 = vector.shape_cast %38 : vector<1x1x8xf32> to vector<1x8xf32>
      %40 = vector.shape_cast %39 : vector<1x8xf32> to vector<1x1x8xf32>
      %cst_18 = arith.constant dense<0.000000e+00> : vector<1xf32>
      %41 = vector.multi_reduction <add>, %40, %cst_18 [1, 2] : vector<1x1x8xf32> to vector<1xf32>
      %42 = vector.shape_cast %41 : vector<1xf32> to vector<1x1x1xf32>
      %43 = vector.extract %42[0, 0, 0] : f32 from vector<1x1x1xf32>
      %cst_19 = arith.constant 1.250000e-01 : f32
      %44 = arith.mulf %43, %cst_19 : f32
      %c1 = arith.constant 1 : index
      %45 = memref.load %arg8[%c1] : memref<5xf32, #tpu.memory_space<smem>>
      memref.store %44, %arg8[%c1] : memref<5xf32, #tpu.memory_space<smem>>
      %46 = arith.addf %37, %44 : f32
      %47 = vector.extract_strided_slice %28 {offsets = [2, 0, 0], sizes = [1, 1, 8], strides = [1, 1, 1]} : vector<3x1x8xf32> to vector<1x1x8xf32>
      %48 = vector.shape_cast %47 : vector<1x1x8xf32> to vector<1x8xf32>
      %49 = vector.shape_cast %48 : vector<1x8xf32> to vector<1x1x8xf32>
      %cst_20 = arith.constant dense<0.000000e+00> : vector<1xf32>
      %50 = vector.multi_reduction <add>, %49, %cst_20 [1, 2] : vector<1x1x8xf32> to vector<1xf32>
      %51 = vector.shape_cast %50 : vector<1xf32> to vector<1x1x1xf32>
      %52 = vector.extract %51[0, 0, 0] : f32 from vector<1x1x1xf32>
      %cst_21 = arith.constant 1.250000e-01 : f32
      %53 = arith.mulf %52, %cst_21 : f32
      %c2 = arith.constant 2 : index
      %54 = memref.load %arg8[%c2] : memref<5xf32, #tpu.memory_space<smem>>
      memref.store %53, %arg8[%c2] : memref<5xf32, #tpu.memory_space<smem>>
      %55 = arith.addf %46, %53 : f32
      %c0_22 = arith.constant 0 : index
      %c0_23 = arith.constant 0 : index
      %56 = vector.load %arg9[%c0_22, %c0_23] : memref<1x128xf32, #tpu.memory_space<vmem>>, vector<1x128xf32>
      %cst_24 = arith.constant 0.000000e+00 : f32
      %57 = vector.broadcast %cst_24 : f32 to vector<1x128xf32>
      %58 = arith.cmpf ogt, %56, %57 : vector<1x128xf32>
      %59 = math.sqrt %56 : vector<1x128xf32>
      %cst_25 = arith.constant 0.000000e+00 : f32
      %60 = vector.broadcast %cst_25 : f32 to vector<1x128xf32>
      %61 = arith.select %58, %59, %60 : vector<1x128xi1>, vector<1x128xf32>
      %c0_26 = arith.constant 0 : index
      %c0_27 = arith.constant 0 : index
      %62 = vector.load %arg6[%c0_26, %c0_27] : memref<1x128xf32, #tpu.memory_space<vmem>>, vector<1x128xf32>
      %63 = arith.mulf %62, %61 : vector<1x128xf32>
      %64 = vector.shape_cast %63 : vector<1x128xf32> to vector<1x1x128xf32>
      %cst_28 = arith.constant dense<0.000000e+00> : vector<1xf32>
      %65 = vector.multi_reduction <add>, %64, %cst_28 [1, 2] : vector<1x1x128xf32> to vector<1xf32>
      %66 = vector.shape_cast %65 : vector<1xf32> to vector<1x1x1xf32>
      %67 = vector.extract %66[0, 0, 0] : f32 from vector<1x1x1xf32>
      %c3 = arith.constant 3 : index
      %68 = memref.load %arg8[%c3] : memref<5xf32, #tpu.memory_space<smem>>
      memref.store %67, %arg8[%c3] : memref<5xf32, #tpu.memory_space<smem>>
      %69 = arith.addf %55, %67 : f32
      %c4 = arith.constant 4 : index
      %70 = memref.load %arg8[%c4] : memref<5xf32, #tpu.memory_space<smem>>
      memref.store %69, %arg8[%c4] : memref<5xf32, #tpu.memory_space<smem>>
    } else {
    }
    return
  }
  func.func @transform_0(%arg0: i32) -> (i32, i32, i32) {
    %c0_i32 = arith.constant 0 : i32
    %c0_i32_0 = arith.constant 0 : i32
    %c0_i32_1 = arith.constant 0 : i32
    %c0_i32_2 = arith.constant 0 : i32
    return %c0_i32, %c0_i32_0, %c0_i32_1 : i32, i32, i32
  }
  func.func @transform_1(%arg0: i32) -> (i32, i32, i32) {
    %c0_i32 = arith.constant 0 : i32
    %c0_i32_0 = arith.constant 0 : i32
    %c0_i32_1 = arith.constant 0 : i32
    %c0_i32_2 = arith.constant 0 : i32
    return %c0_i32, %c0_i32_0, %c0_i32_1 : i32, i32, i32
  }
  func.func @transform_2(%arg0: i32) -> (i32, i32) {
    %c0_i32 = arith.constant 0 : i32
    %c0_i32_0 = arith.constant 0 : i32
    return %arg0, %c0_i32 : i32, i32
  }
  func.func @transform_3(%arg0: i32) -> (i32, i32) {
    %c0_i32 = arith.constant 0 : i32
    %c0_i32_0 = arith.constant 0 : i32
    return %arg0, %c0_i32 : i32, i32
  }
  func.func @transform_4(%arg0: i32) -> (i32, i32) {
    %c0_i32 = arith.constant 0 : i32
    %c0_i32_0 = arith.constant 0 : i32
    return %arg0, %c0_i32 : i32, i32
  }
  func.func @transform_5(%arg0: i32) -> (i32, i32) {
    %c0_i32 = arith.constant 0 : i32
    %c0_i32_0 = arith.constant 0 : i32
    %c0_i32_1 = arith.constant 0 : i32
    return %c0_i32, %c0_i32_0 : i32, i32
  }
  func.func @transform_6(%arg0: i32) -> i32 {
    %c0_i32 = arith.constant 0 : i32
    %c0_i32_0 = arith.constant 0 : i32
    return %c0_i32 : i32
  }
  func.func @transform_7(%arg0: i32) -> i32 {
    %c0_i32 = arith.constant 0 : i32
    %c0_i32_0 = arith.constant 0 : i32
    return %c0_i32 : i32
  }
}

</mosaic_0001>

<bundles_post_ra>
// kernel: forward.1
= control target key start
LH: loop header
LB: loop body
LE: loop exit
PB: predicated region body
PF: predicated region fallthrough
CT: control target
= control target key end

     0   :  { %13 = vsyncpa [#allocation5], 0  ;;  %v411_v0 = vmov 0.0   ;;  %s579_s0 = inlined_call_operand.vmem [shape: f32[3,10,8], index: 0, kind: input, shape index: {}]   ;;  %s580_s1 = inlined_call_operand.vmem [shape: s32[3,1,8], index: 1, kind: input, shape index: {}]   ;;  %s581_s2 = inlined_call_operand.vmem [shape: f32[32,128], index: 2, kind: input, shape index: {}]   ;;  %s582_s3 = inlined_call_operand.vmem [shape: f32[32,128], index: 3, kind: input, shape index: {}]   ;;  %s583_s4 = inlined_call_operand.vmem [shape: s8[32,1], index: 4, kind: input, shape index: {}]   ;;  %s584_s5 = inlined_call_operand.vmem [shape: f32[1,128], index: 5, kind: input, shape index: {}]   ;;  %s585_s6 = inlined_call_operand.<no memory space> [shape: s32[1], index: 6, kind: input, shape index: {}]   ;;  %s586_s7 = inlined_call_operand.vmem [shape: f32[5], index: 7, kind: output, shape index: {}]  }
   0x1   :  { %32 = vst [vmem:[#allocation2] sm:$0x1] %v411_v0  ;;  %p346_p0 = scmp.eq.s32.totalorder %s585_s6, 0 }
   0x3   :  { %37 = sbr.rel (%p346_p0) target bundleno = 189 (0xbd), region = 37 }
   0x8   :  { %v359_v1 = vld [vmem:[%s583_s4] sm:$0xff]   ;;  %v412_v4 = vmov 0   ;;  %v39_v8 = vld [vmem:[%s581_s2 + $0x8] sm:$0xff]  ;;  %v41_v14 = vld [vmem:[%s581_s2 + $0x18] sm:$0xff]  ;;  %v62_v26 = vlaneseq  ;;  %v413_v30 = vmov 0.0  }
   0x9   :  { %v38_v2 = vld [vmem:[%s581_s2] sm:$0xff]  ;;  %373 = vset.pattern.permute.xlu2 %v412_v4  ;;  %v357_v5 = vunpack.c.2.s8 %v359_v1  ;;  %372 = vset.pattern.permute.xlu0 %v412_v4  ;;  %v353_v6 = vunpack.c.0.s8 %v359_v1  ;;  %v43_v9 = vld [vmem:[%s582_s3 + $0x8] sm:$0xff]  ;;  %v354_v12 = vunpack.c.1.s8 %v359_v1  ;;  %v45_v15 = vld [vmem:[%s582_s3 + $0x18] sm:$0xff]  ;;  %v358_v17 = vunpack.c.3.s8 %v359_v1 }
   0xa   :  { %v42_v3 = vld [vmem:[%s582_s3] sm:$0xff]  ;;  %v47_v11 = vsub.f32 %v39_v8, %v43_v9  ;;  %v49_v16 = vsub.f32 %v41_v14, %v45_v15  ;;  %v40_v19 = vld [vmem:[%s581_s2 + $0x10] sm:$0xff]  ;;  %v63_v27 = vand.u32 127, %v62_v26 }
   0xb   :  { %v46_v7 = vsub.f32 %v38_v2, %v42_v3  ;;  %79 = vperm.xlu2 %373, %v357_v5   ;;  %73 = vperm.xlu0 %372, %v353_v6   ;;  %v44_v20 = vld [vmem:[%s582_s3 + $0x10] sm:$0xff]  ;;  %v96_v50 = vld [vmem:[#allocation2] sm:$0x1] }
   0xc   :  { %v51_v13 = vmul.f32 %v47_v11, %v47_v11  ;;  %v53_v18 = vmul.f32 %v49_v16, %v49_v16  ;;  %v48_v21 = vsub.f32 %v40_v19, %v44_v20 }
   0xd   :  { %v50_v10 = vmul.f32 %v46_v7, %v46_v7 }
   0xe   :  { %v52_v22 = vmul.f32 %v48_v21, %v48_v21 }
   0xf   :  { %54 = vadd.xlane.f32.xlu1 %v50_v10 }
  0x13   :  { %76 = vperm.xlu0 %372, %v354_v12  }
  0x17   :  { %56 = vadd.xlane.f32.xlu1 %v51_v13 }
  0x1b   :  { %82 = vperm.xlu0 %372, %v358_v17  }
  0x1f   :  { %60 = vadd.xlane.f32.xlu1 %v53_v18 }
  0x34   :  { %58 = vadd.xlane.f32.xlu2 %v52_v22 }
  0x65   :  { %v80_v29 = vpop.permute.xlu2 %79 }
  0x66   :  { %vm86_vm2 = vcmp.eq.s32.totalorder %v63_v27, %v80_v29 }
  0x67   :  { %v349_v38 = vsel %vm86_vm2, 1.0, %v413_v30 }
  0x7d   :  { %v74_v23 = vpop.permute.xlu0 %73 }
  0x7e   :  { %vm84_vm0 = vcmp.eq.s32.totalorder %v63_v27, %v74_v23 }
  0x7f   :  { %v347_v31 = vsel %vm84_vm0, 1.0, %v413_v30 }
  0x82   :  { %v55_v24 = vpop.xlane.xlu1 %54 }
  0x83   :  { %v97_v34 = vmul.f32 %v347_v31, %v55_v24 }
  0x85   :  { %v77_v25 = vpop.permute.xlu0 %76 }
  0x86   :  { %vm85_vm1 = vcmp.eq.s32.totalorder %v63_v27, %v77_v25 }
  0x87   :  { %v348_v32 = vsel %vm85_vm1, 1.0, %v413_v30 }
  0x8a   :  { %v57_v28 = vpop.xlane.xlu1 %56 }
  0x8b   :  { %v98_v35 = vmul.f32 %v348_v32, %v57_v28 }
  0x8d   :  { %v83_v33 = vpop.permute.xlu0 %82  ;;  %v101_v40 = vadd.f32 %v98_v35, %v97_v34 }
  0x8e   :  { %vm87_vm3 = vcmp.eq.s32.totalorder %v63_v27, %v83_v33 }
  0x8f   :  { %v350_v36 = vsel %vm87_vm3, 1.0, %v413_v30 }
  0x92   :  { %v61_v37 = vpop.xlane.xlu1 %60 }
  0x93   :  { %v100_v42 = vmul.f32 %v350_v36, %v61_v37 }
  0xa7   :  { %v59_v39 = vpop.xlane.xlu2 %58 }
  0xa8   :  { %v99_v41 = vmul.f32 %v349_v38, %v59_v39 }
  0xaa   :  { %v102_v43 = vadd.f32 %v101_v40, %v99_v41 }
  0xac   :  { %v103_v44 = vadd.f32 %v102_v43, %v100_v42 }
  0xae   :  { %v104_v45 = vrot.slane %v103_v44, 4 }
  0xb0   :  { %v105_v46 = vadd.f32 %v104_v45, %v103_v44 }
  0xb2   :  { %v106_v47 = vrot.slane %v105_v46, 2 }
  0xb4   :  { %v107_v48 = vadd.f32 %v106_v47, %v105_v46 }
  0xb6   :  { %v108_v49 = vrot.slane %v107_v48, 1 }
  0xb8   :  { %v109_v51 = vadd.f32 %v108_v49, %v107_v48 }
  0xba   :  { %v110_v52 = vadd.f32 %v109_v51, %v96_v50 }
  0xbc   :  { %111 = vst [vmem:[#allocation2] sm:$0x1] %v110_v52 }
  0xbd PF:  { %v119_v53 = vld [vmem:[%s579_s0 + $0x20] sm:$0xff]  ;;  %v120_v54 = vld [vmem:[%s579_s0 + $0x28] sm:$0x3]  ;;  %vm124_vm4 = vcmask 64512   ;;  %vm126_vm5 = vcmask 58368   ;;  %v501_v58 = vld [vmem:[%s579_s0 + $0x10] sm:$0xff]  ;;  %v207_v4 = vlaneseq }
  0xbe   :  { %v144_v55 = vsel %vm124_vm4, %v119_v53, -inf  ;;  %v115_v56 = vld [vmem:[%s579_s0] sm:$0xff]  ;;  %v116_v57 = vld [vmem:[%s579_s0 + $0x8] sm:$0x3]  ;;  %v145_v59 = vsel %vm126_vm5, %v120_v54, -inf  ;;  %v135_v1 = vsel %vm124_vm4, %v501_v58, -inf }
  0xbf   :  { %v125_v60 = vsel %vm124_vm4, %v115_v56, -inf  ;;  %v127_v61 = vsel %vm126_vm5, %v116_v57, -inf  ;;  %v146_v62 = vmax.f32 %v144_v55, %v145_v59  ;;  %v509_v0 = vld [vmem:[%s579_s0 + $0x18] sm:$0x3]  ;;  %v208_v10 = vshrl.u32 %v207_v4, 7  ;;  %s336_s2 = sshll.u32 %s586_s7, 4  ;;  %s337_s2 = int_to_ptr.vmem [resolvable:$true] %s336_s2 }
  0xc0   :  { %v128_v63 = vmax.f32 %v125_v60, %v127_v61  ;;  %v136_v2 = vsel %vm126_vm5, %v509_v0, -inf  ;;  %v374_v14 = vld [vmem:[%s580_s1 + $0x2] ss:$0 sm:$0xff]  ;;  %v375_v21 = vld [vmem:[%s580_s1] ss:$0 sm:$0xff]  ;;  %vm255_vm15 = vcmask 57344  }
  0xc1   :  { %v147_v3 = vrot.slane %v146_v62, 4  ;;  %v137_v6 = vmax.f32 %v135_v1, %v136_v2  ;;  %v209_v18 = vadd.s32 8, %v208_v10  ;;  %vm217_vm6 = vcmp.eq.s32.totalorder %v208_v10, %v374_v14  ;;  %v376_v34 = vld [vmem:[%s580_s1 + $0x1] ss:$0 sm:$0xff]  ;;  %s414_s20 = smov [#allocation4]  }
  0xc2   :  { %v129_v5 = vrot.slane %v128_v63, 4  ;;  %v223_v29 = vsel %vm217_vm6, %v119_v53, 0.0  ;;  %vm213_vm8 = vcmp.eq.s32.totalorder %v208_v10, %v375_v21  ;;  %vm215_vm10 = vcmp.eq.s32.totalorder %v208_v10, %v376_v34 }
  0xc3   :  { %v148_v7 = vmax.f32 %v146_v62, %v147_v3  ;;  %v138_v12 = vrot.slane %v137_v6, 4  ;;  %v518_v20 = vld [vmem:[#allocation2] sm:$0x1]  ;;  %vm218_vm7 = vcmp.eq.s32.totalorder %v209_v18, %v374_v14  ;;  %vm214_vm9 = vcmp.eq.s32.totalorder %v209_v18, %v375_v21 }
  0xc4   :  { %v130_v8 = vmax.f32 %v128_v63, %v129_v5  ;;  %377 = vrsqrt.f32 %v518_v20  ;;  %v224_v35 = vsel %vm218_vm7, %v120_v54, 0.0  ;;  %v219_v39 = vsel %vm213_vm8, %v115_v56, 0.0 }
  0xc5   :  { %v149_v9 = vrot.slane %v148_v7, 2  ;;  %v139_v16 = vmax.f32 %v137_v6, %v138_v12  ;;  %v220_v41 = vsel %vm214_vm9, %v116_v57, 0.0  ;;  %v243_v44 = vsel %vm124_vm4, %v223_v29, 0.0 }
  0xc6   :  { %v131_v11 = vrot.slane %v130_v8, 2  ;;  %v244_v45 = vsel %vm126_vm5, %v224_v35, 0.0  ;;  %vm216_vm11 = vcmp.eq.s32.totalorder %v209_v18, %v376_v34  ;;  %v225_v48 = vsel %vm124_vm4, %v219_v39, 0.0 }
  0xc7   :  { %v150_v13 = vmax.f32 %v148_v7, %v149_v9  ;;  %v140_v22 = vrot.slane %v139_v16, 2  ;;  %v226_v49 = vsel %vm126_vm5, %v220_v41, 0.0  ;;  %v245_v52 = vadd.f32 %v244_v45, %v243_v44 }
  0xc8   :  { %v132_v15 = vmax.f32 %v130_v8, %v131_v11  ;;  %vm307_vm12 = vcmp.eq.f32.partialorder %v518_v20, inf  ;;  %vm309_vm13 = vcmp.eq.f32.partialorder %v518_v20, 0.0  ;;  %vm299_vm14 = vcmp.gt.f32.partialorder %v518_v20, 0.0 }
  0xc9   :  { %v151_v17 = vrot.slane %v150_v13, 1  ;;  %v141_v25 = vmax.f32 %v139_v16, %v140_v22  ;;  %vm315_vm0 = vcmask 1040384  }
  0xca   :  { %v133_v19 = vrot.slane %v132_v15, 1  ;;  %v537_v40 = vpop.eup %377 }
  0xcb   :  { %v523_v23 = vmax.f32 %v150_v13, %v151_v17  ;;  %v142_v31 = vrot.slane %v141_v25, 1  ;;  %v301_v50 = vmul.f32 %v537_v40, %v518_v20 }
  0xcc   :  { %v525_v24 = vmax.f32 %v132_v15, %v133_v19 }
  0xcd   :  { %v157_v26 = vsub.f32 %v119_v53, %v523_v23  ;;  %v158_v27 = vsub.f32 %v120_v54, %v523_v23  ;;  %v535_v38 = vmax.f32 %v141_v25, %v142_v31  ;;  %v221_v53 = vsel %vm215_vm10, %v501_v58, 0.0 }
  0xce   :  { %v153_v28 = vsub.f32 %v115_v56, %v525_v24  ;;  %v154_v30 = vsub.f32 %v116_v57, %v525_v24  ;;  %v222_v54 = vsel %vm216_vm11, %v509_v0, 0.0  ;;  %v227_v57 = vadd.f32 %v226_v49, %v225_v48 }
  0xcf   :  { %v167_v32 = vmul.f32 1.442695, %v157_v26  ;;  %v169_v33 = vmul.f32 1.442695, %v158_v27  ;;  %v155_v42 = vsub.f32 %v501_v58, %v535_v38  ;;  %v156_v43 = vsub.f32 %v509_v0, %v535_v38 }
  0xd0   :  { %v159_v36 = vmul.f32 1.442695, %v153_v28  ;;  %v161_v37 = vmul.f32 1.442695, %v154_v30  ;;  %v302_v61 = vmul.f32 %v537_v40, %v301_v50  ;;  %v234_v2 = vsel %vm124_vm4, %v221_v53, 0.0 }
  0xd1   :  { %379 = vpow2.f32 %v167_v32  ;;  %v163_v46 = vmul.f32 1.442695, %v155_v42  ;;  %v165_v47 = vmul.f32 1.442695, %v156_v43  ;;  %v235_v3 = vsel %vm126_vm5, %v222_v54, 0.0 }
  0xd2   :  { %381 = vpow2.f32 %v169_v33  ;;  %v246_v58 = vrot.slane %v245_v52, 4  ;;  %v228_v7 = vrot.slane %v227_v57, 4  ;;  %v236_v10 = vadd.f32 %v235_v3, %v234_v2  ;;  %v313_v3 = vld [vmem:[%s584_s5] sm:$0x1] }
  0xd3   :  { %383 = vpow2.f32 %v159_v36  ;;  %v303_v13 = vmul.f32 0.5, %v302_v61  ;;  %v310_v50 = vand.u32 2147483648, %v518_v20 }
  0xd4   :  { %385 = vpow2.f32 %v161_v37  ;;  %v247_v15 = vadd.f32 %v246_v58, %v245_v52  ;;  %v229_v19 = vadd.f32 %v228_v7, %v227_v57  ;;  %v237_v22 = vrot.slane %v236_v10, 4 }
  0xd5   :  { %387 = vpow2.f32 %v163_v46  ;;  %v304_v27 = vsub.f32 1.5, %v303_v13 }
  0xd6   :  { %389 = vpow2.f32 %v165_v47  ;;  %v248_v28 = vrot.slane %v247_v15, 2  ;;  %v230_v32 = vrot.slane %v229_v19, 2  ;;  %v238_v34 = vadd.f32 %v237_v22, %v236_v10 }
  0xd7   :  { %v380_v51 = vpop.eup %379  ;;  %v305_v37 = vmul.f32 %v537_v40, %v304_v27 }
  0xd8   :  { %v382_v55 = vpop.eup %381  ;;  %v189_v56 = vsel %vm124_vm4, %v380_v51, 0.0  ;;  %v249_v39 = vadd.f32 %v248_v28, %v247_v15  ;;  %v231_v43 = vadd.f32 %v230_v32, %v229_v19  ;;  %v239_v45 = vrot.slane %v238_v34, 2 }
  0xd9   :  { %v384_v59 = vpop.eup %383  ;;  %v190_v60 = vsel %vm126_vm5, %v382_v55, 0.0  ;;  %v306_v46 = vmul.f32 %v305_v37, %v518_v20 }
  0xda   :  { %v386_v62 = vpop.eup %385  ;;  %v191_v63 = vadd.f32 %v190_v60, %v189_v56  ;;  %v171_v1 = vsel %vm124_vm4, %v384_v59, 0.0  ;;  %v250_v47 = vrot.slane %v249_v39, 1  ;;  %v232_v49 = vrot.slane %v231_v43, 1 }
  0xdb   :  { %v172_v0 = vsel %vm126_vm5, %v386_v62, 0.0  ;;  %v388_v4 = vpop.eup %387  ;;  %v240_v51 = vadd.f32 %v239_v45, %v238_v34  ;;  %v308_v52 = vsel %vm307_vm12, %v518_v20, %v306_v46 }
  0xdc   :  { %v192_v5 = vrot.slane %v191_v63, 4  ;;  %v173_v6 = vadd.f32 %v172_v0, %v171_v1  ;;  %v390_v8 = vpop.eup %389  ;;  %v180_v9 = vsel %vm124_vm4, %v388_v4, 0.0  ;;  %v251_v54 = vadd.f32 %v250_v47, %v249_v39 }
  0xdd   :  { %v181_v14 = vsel %vm126_vm5, %v390_v8, 0.0  ;;  %v233_v56 = vadd.f32 %v232_v49, %v231_v43  ;;  %v311_v60 = vsel %vm309_vm13, %v310_v50, %v308_v52  ;;  %v241_v61 = vrot.slane %v240_v51, 1 }
  0xde   :  { %v193_v11 = vadd.f32 %v192_v5, %v191_v63  ;;  %v174_v12 = vrot.slane %v173_v6, 4  ;;  %v182_v16 = vadd.f32 %v181_v14, %v180_v9  ;;  %v312_v2 = vsel %vm299_vm14, %v311_v60, 0.0 }
  0xdf   :  { %v242_v20 = vadd.f32 %v241_v61, %v240_v51 }
  0xe0   :  { %v194_v17 = vrot.slane %v193_v11, 2  ;;  %v175_v18 = vadd.f32 %v174_v12, %v173_v6  ;;  %v183_v21 = vrot.slane %v182_v16, 4  ;;  %v314_v6 = vmul.f32 %v313_v3, %v312_v2 }
  0xe2   :  { %v195_v25 = vadd.f32 %v194_v17, %v193_v11  ;;  %v176_v26 = vrot.slane %v175_v18, 2  ;;  %v184_v29 = vadd.f32 %v183_v21, %v182_v16 }
  0xe4   :  { %v196_v30 = vrot.slane %v195_v25, 1  ;;  %v177_v31 = vadd.f32 %v176_v26, %v175_v18  ;;  %v185_v33 = vrot.slane %v184_v29, 2 }
  0xe6   :  { %v197_v35 = vadd.f32 %v196_v30, %v195_v25  ;;  %v178_v36 = vrot.slane %v177_v31, 1  ;;  %v186_v41 = vadd.f32 %v185_v33, %v184_v29 }
  0xe8   :  { %391 = vlog2.f32 %v197_v35  ;;  %v179_v42 = vadd.f32 %v178_v36, %v177_v31  ;;  %v187_v44 = vrot.slane %v186_v41, 1 }
  0xea   :  { %393 = vlog2.f32 %v179_v42  ;;  %v188_v48 = vadd.f32 %v187_v44, %v186_v41 }
  0xec   :  { %395 = vlog2.f32 %v188_v48 }
  0xee   :  { %v392_v40 = vpop.eup %391 }
  0xef   :  { %v203_v53 = vmul.f32 0.6931472, %v392_v40 }
  0xf0   :  { %v394_v55 = vpop.eup %393 }
  0xf1   :  { %v206_v57 = vadd.f32 %v203_v53, %v523_v23  ;;  %v199_v59 = vmul.f32 0.6931472, %v394_v55 }
  0xf2   :  { %v396_v62 = vpop.eup %395 }
  0xf3   :  { %v254_v63 = vsub.f32 %v206_v57, %v251_v54  ;;  %v204_v1 = vadd.f32 %v199_v59, %v525_v24  ;;  %v201_v58 = vmul.f32 0.6931472, %v396_v62  ;;  %v316_v24 = vsel %vm315_vm0, %v314_v6, 0.0 }
  0xf5   :  { %v284_v0 = vsel %vm255_vm15, %v254_v63, 0.0  ;;  %v252_v4 = vsub.f32 %v204_v1, %v233_v56  ;;  %v205_v23 = vadd.f32 %v201_v58, %v535_v38 }
  0xf6   :  { %285 = vadd.xlane.f32.xlu1 %v284_v0 }
  0xf7   :  { %v256_v5 = vsel %vm255_vm15, %v252_v4, 0.0  ;;  %v253_v7 = vsub.f32 %v205_v23, %v242_v20 }
  0xf8   :  { %257 = vadd.xlane.f32.xlu0 %v256_v5 }
  0xf9   :  { %v270_v8 = vsel %vm255_vm15, %v253_v7, 0.0 }
  0xfe   :  { %317 = vadd.xlane.f32.xlu1 %v316_v24 }
 0x100   :  { %271 = vadd.xlane.f32.xlu0 %v270_v8 }
 0x169   :  { %v286_v9 = vpop.xlane.xlu1 %285 }
 0x16a   :  { %v287_v10 = vrot.slane %v286_v9, 4 }
 0x16b   :  { %v258_v11 = vpop.xlane.xlu0 %257 }
 0x16c   :  { %v259_v12 = vrot.slane %v258_v11, 4  ;;  %v288_v14 = vadd.f32 %v287_v10, %v286_v9 }
 0x16e   :  { %v260_v13 = vadd.f32 %v259_v12, %v258_v11  ;;  %v289_v18 = vrot.slane %v288_v14, 2 }
 0x170   :  { %v261_v15 = vrot.slane %v260_v13, 2  ;;  %v290_v29 = vadd.f32 %v289_v18, %v288_v14 }
 0x171   :  { %v318_v16 = vpop.xlane.xlu1 %317 }
 0x172   :  { %v319_v38 = vrot.slane %v318_v16, 4  ;;  %v262_v17 = vadd.f32 %v261_v15, %v260_v13  ;;  %v291_v34 = vrot.slane %v290_v29, 1 }
 0x173   :  { %v272_v19 = vpop.xlane.xlu0 %271 }
 0x174   :  { %v320_v21 = vadd.f32 %v319_v38, %v318_v16  ;;  %v273_v22 = vrot.slane %v272_v19, 4  ;;  %v263_v25 = vrot.slane %v262_v17, 1  ;;  %v292_v39 = vadd.f32 %v291_v34, %v290_v29 }
 0x176   :  { %v321_v26 = vrot.slane %v320_v21, 2  ;;  %v274_v27 = vadd.f32 %v273_v22, %v272_v19  ;;  %v264_v28 = vadd.f32 %v263_v25, %v262_v17 }
 0x178   :  { %v322_v30 = vadd.f32 %v321_v26, %v320_v21  ;;  %v275_v31 = vrot.slane %v274_v27, 2  ;;  %360 = vpush %v264_v28 }
 0x17a   :  { %v276_v32 = vadd.f32 %v275_v31, %v274_v27  ;;  %v323_v33 = vrot.slane %v322_v30, 1 }
 0x17c   :  { %v277_v35 = vrot.slane %v276_v32, 1  ;;  %v324_v37 = vadd.f32 %v323_v33, %v322_v30 }
 0x17e   :  { %v278_v36 = vadd.f32 %v277_v35, %v276_v32 }
 0x180   :  { %362 = vpush %v278_v36 }
 0x181   :  { %364 = vpush %v292_v39 }
 0x182   :  { %366 = vpush %v324_v37 }
 0x1a9   :  { %s361_s5 = spop %360 }
 0x1aa   :  { %s266_s10 = smul.f32 0.125, %s361_s5 }
 0x1ac   :  { %268 = sst [smem:[#allocation4]] %s266_s10 }
 0x1b1   :  { %s363_s11 = spop %362 }
 0x1b2   :  { %s280_s12 = smul.f32 0.125, %s363_s11  ;;  %s365_s13 = spop %364 }
 0x1b3   :  { %s294_s14 = smul.f32 0.125, %s365_s13  ;;  %s367_s16 = spop %366 }
 0x1b4   :  { %282 = sst [smem:[#allocation4 + $0x1]] %s280_s12 }
 0x1b5   :  { %s283_s15 = sadd.f32 %s280_s12, %s266_s10 }
 0x1b6   :  { %296 = sst [smem:[#allocation4 + $0x2]] %s294_s14 }
 0x1b7   :  { %s297_s3 = sadd.f32 %s294_s14, %s283_s15 }
 0x1b8   :  { %327 = sst [smem:[#allocation4 + $0x3]] %s367_s16 }
 0x1b9   :  { %s328_s19 = sadd.f32 %s367_s16, %s297_s3 }
 0x1bb   :  { %330 = sst [smem:[#allocation4 + $0x4]] %s328_s19 }
 0x1bc   :  { %339 = dma.smem_to_vmem %s414_s20, 16, %s337_s2, [#allocation5]  }
 0x1bd   :  { %409 = dma.done.wait [#allocation5], 16  }
 0x1be   :  { %410 = vsyncadd [#allocation5], 4294967280 }
 0x1bf   :  { %344 = sfence }
 0x1c0   :  { %345 = vsyncpa [#allocation5], 1 }

</bundles_post_ra>
